<compile_context>
chip_gen: v7x
topology: tpu7x:2x2x1
jax: 0.10.0
libtpu: 0.0.40
codegen_flags: <defaults>
</compile_context>

<pallas_src>
import functools

import jax
import jax.numpy as jnp
from jax import lax
from jax.experimental import pallas as pl
from jax.experimental.pallas import tpu as pltpu

_SUB = 8
_LANE = 128
_TILE = _SUB * _LANE  # 1024 elements per (8,128) vreg tile


def _make_kernel(gsub):
    """gsub = (8,128)-tiles consumed per inner-loop iteration (static)."""

    def kernel(pred_ref, target_ref, inter_ref, union_ref, cnt_ref):
        k = pl.program_id(1)  # reduction ("arbitrary") axis

        @pl.when(k == 0)
        def _init():
            inter_ref[...] = jnp.zeros_like(inter_ref)
            union_ref[...] = jnp.zeros_like(union_ref)
            cnt_ref[...] = jnp.zeros_like(cnt_ref)

        b = pred_ref.shape[0]
        gblk = pred_ref.shape[1]
        n_sub = gblk // gsub  # gblk is a multiple of gsub by construction

        def body(g, carry):
            it, un, ct = carry
            start = pl.multiple_of(g * gsub, gsub)
            p = pred_ref[:, pl.ds(start, gsub), :, :].astype(jnp.float32)
            t = target_ref[:, pl.ds(start, gsub), :, :].astype(jnp.float32)
            # sums over axis 1 combine distinct vregs -> pure VPU adds, no XLU.
            it = it + jnp.sum(p * t, axis=1)
            un = un + jnp.sum(p + t, axis=1)
            ct = ct + jnp.sum(jnp.where(p > 0.0, 1.0, 0.0), axis=1)
            return it, un, ct

        zero = jnp.zeros((b, _SUB, _LANE), jnp.float32)
        it, un, ct = lax.fori_loop(
            0, n_sub, body, (zero, zero, zero), unroll=max(1, min(n_sub, 2))
        )

        # Output blocks are resident across the reduction axis (same block
        # index for every k), so these are cheap VMEM read-modify-writes.
        inter_ref[...] += it[jnp.newaxis]
        union_ref[...] += un[jnp.newaxis]
        cnt_ref[...] += ct[jnp.newaxis]

    return kernel


@functools.partial(jax.jit, static_argnames=("lambda_iou", "lambda_l1"))
def soft_iou_l1_loss(pred, target, *, lambda_iou=0.8, lambda_l1=0.2):
    """pred, target: (B, C, H, W). Returns scalar float32 loss."""
    assert pred.shape == target.shape and pred.ndim == 4
    B, C, H, W = pred.shape
    N = C * H * W
    itemsize = jnp.dtype(pred.dtype).itemsize

    # ---- choose tiling (all static, derived from shapes) -------------------
    G0 = pl.cdiv(N, _TILE)              # (8,128) tiles per batch row
    gsub = max(1, 8 // B)               # tiles per inner-loop step (small live set)
    # Big DMA blocks (~2 MiB per input per grid step) so the per-step overhead
    # (~0.35 us) is amortized, but keep >= ~4 real blocks so the pipeline
    # stays multi-step and zero-padding stays small.
    target_block_bytes = 2 * 1024 * 1024
    gblk = max(gsub, (target_block_bytes // (B * _TILE * itemsize)) // gsub * gsub)
    gblk = min(gblk, pl.cdiv(pl.cdiv(G0, 4), gsub) * gsub)
    gblk = max(gblk, gsub)
    steps_total = pl.cdiv(G0, gblk)
    n_shards = 2 if steps_total >= 2 else 1   # feeds both TensorCores on v7x
    steps = pl.cdiv(steps_total, n_shards)
    G = n_shards * steps * gblk               # padded tile count

    # ---- build lane/sublane-dense slabs ------------------------------------
    # reshape (B,C,H,W)->(B,N) and (B,N)->(B,G,8,128) are free (contiguous);
    # the pad copy only happens when N is not a multiple of 1024.
    pred2 = pred.reshape(B, N)
    target2 = target.reshape(B, N)
    pad = G * _TILE - N
    if pad:
        # TODO(synk): ragged tails incur one HBM copy via jnp.pad; aligned
        # workloads (N % 1024 == 0) take the zero-copy path.
        pred2 = jnp.pad(pred2, ((0, 0), (0, pad)))
        target2 = jnp.pad(target2, ((0, 0), (0, pad)))
    pred3 = pred2.reshape(B, G, _SUB, _LANE)
    target3 = target2.reshape(B, G, _SUB, _LANE)

    block = (B, gblk, _SUB, _LANE)
    block_bytes = B * gblk * _TILE * itemsize
    acc_shape = (n_shards, B, _SUB, _LANE)
    acc_block = (1, B, _SUB, _LANE)

    in_map = lambda s, k: (0, s * steps + k, 0, 0)
    out_map = lambda s, k: (s, 0, 0, 0)

    cost = pl.CostEstimate(
        flops=7 * B * G * _TILE,
        transcendentals=0,
        bytes_accessed=2 * B * G * _TILE * itemsize,
    )

    inter_p, union_p, cnt_p = pl.pallas_call(
        _make_kernel(gsub),
        out_shape=(
            jax.ShapeDtypeStruct(acc_shape, jnp.float32),
            jax.ShapeDtypeStruct(acc_shape, jnp.float32),
            jax.ShapeDtypeStruct(acc_shape, jnp.float32),
        ),
        grid_spec=pltpu.PrefetchScalarGridSpec(
            num_scalar_prefetch=0,
            grid=(n_shards, steps),
            in_specs=[
                pl.BlockSpec(block, in_map),
                pl.BlockSpec(block, in_map),
            ],
            out_specs=[
                pl.BlockSpec(acc_block, out_map),
                pl.BlockSpec(acc_block, out_map),
                pl.BlockSpec(acc_block, out_map),
            ],
        ),
        compiler_params=pltpu.CompilerParams(
            dimension_semantics=("parallel", "arbitrary"),
            # 2 inputs x 2 pipeline buffers x block + tiny outputs; cap at the
            # v7x per-core physical VMEM (64 MiB) to stay portable.
            vmem_limit_bytes=min(max(32 * 1024 * 1024, 6 * block_bytes),
                                 64 * 1024 * 1024),
        ),
        cost_estimate=cost,
    )(pred3, target3)

    # ---- tiny finalize: cross-shard + cross-lane reduce, scalar math -------
    smooth = jnp.float32(0.1)
    inter = jnp.sum(inter_p, axis=(0, 2, 3))     # (B,)  sum(p*t)
    union = jnp.sum(union_p, axis=(0, 2, 3))     # (B,)  sum(p) + sum(t)
    cnt = jnp.sum(cnt_p)                         # scalar: #(pred > 0)
    ratio = (inter + smooth) / (union - inter + smooth)
    iou_loss = 1.0 - jnp.mean(ratio)
    l1_loss = cnt / jnp.float32(B * C * H * W)
    return lambda_iou * iou_loss + lambda_l1 * l1_loss


def soft_iou_l1_loss_ref(pred, target, lambda_iou=0.8, lambda_l1=0.2):
    smooth = 0.1
    inter = jnp.sum(pred * target, axis=(1, 2, 3))
    ps = jnp.sum(pred, axis=(1, 2, 3))
    ts = jnp.sum(target, axis=(1, 2, 3))
    ratio = (inter + smooth) / (ps + ts - inter + smooth)
    iou = 1.0 - jnp.mean(ratio)
    B, C, H, W = pred.shape
    l1 = jnp.sum((pred > 0).astype(jnp.float32)) / (B * C * H * W)
    return lambda_iou * iou + lambda_l1 * l1


if __name__ == "__main__":
    key = jax.random.PRNGKey(0)
    # Small shapes consistent with the module; extra shapes exercise the
    # multi-shard grid and the ragged / zero-padding path.
    shapes = [(2, 4, 16, 16), (2, 4, 64, 64), (2, 3, 17, 19)]
    for i, shp in enumerate(shapes):
        k1, k2, k3 = jax.random.split(jax.random.fold_in(key, i), 3)
        pred = jax.nn.sigmoid(jax.random.normal(k1, shp, jnp.float32))
        # zero out some entries so the (pred > 0) count is non-trivial
        pred = pred * (jax.random.uniform(k3, shp) > 0.3).astype(jnp.float32)
        target = (jax.random.uniform(k2, shp) > 0.5).astype(jnp.float32)

        loss = soft_iou_l1_loss(pred, target)
        jax.block_until_ready(loss)
        ref = soft_iou_l1_loss_ref(pred, target)
        assert jnp.allclose(loss, ref, rtol=1e-5, atol=1e-5), (shp, loss, ref)
    print("KERNEL_OK")
</pallas_src>

<mosaic_0001>
module attributes {stable_mosaic.version = 11 : i64} {
  func.func @kernel(%arg0: i32, %arg1: i32, %arg2: memref<2x4x8x128xf32, #tpu.memory_space<vmem>>, %arg3: memref<2x4x8x128xf32, #tpu.memory_space<vmem>>, %arg4: memref<1x2x8x128xf32, #tpu.memory_space<vmem>>, %arg5: memref<1x2x8x128xf32, #tpu.memory_space<vmem>>, %arg6: memref<1x2x8x128xf32, #tpu.memory_space<vmem>>) attributes {dimension_semantics = [#tpu.dimension_semantics<parallel>, #tpu.dimension_semantics<arbitrary>], iteration_bounds = array<i64: 1, 1>, scalar_prefetch = 0 : i64, scratch_operands = 0 : i64, tpu.core_type = #tpu.core_type<tc>, window_params = [{transform_indices = @transform_0, window_bounds = array<i64: 2, 4, 8, 128>}, {transform_indices = @transform_1, window_bounds = array<i64: 2, 4, 8, 128>}, {transform_indices = @transform_2, window_bounds = array<i64: 1, 2, 8, 128>}, {transform_indices = @transform_3, window_bounds = array<i64: 1, 2, 8, 128>}, {transform_indices = @transform_4, window_bounds = array<i64: 1, 2, 8, 128>}]} {
    %c0_i32 = arith.constant 0 : i32
    %0 = arith.cmpi eq, %arg1, %c0_i32 : i32
    %1 = arith.extui %0 : i1 to i32
    %c0_i32_0 = arith.constant 0 : i32
    %2 = arith.cmpi ne, %1, %c0_i32_0 : i32
    scf.if %2 {
      %cst_37 = arith.constant 0.000000e+00 : f32
      %35 = vector.broadcast %cst_37 : f32 to vector<1x2x8x128xf32>
      %c0_38 = arith.constant 0 : index
      %c0_39 = arith.constant 0 : index
      %c0_40 = arith.constant 0 : index
      %c0_41 = arith.constant 0 : index
      %36 = vector.load %arg4[%c0_38, %c0_39, %c0_40, %c0_41] : memref<1x2x8x128xf32, #tpu.memory_space<vmem>>, vector<1x2x8x128xf32>
      tpu.vector_store %arg4[%c0_38, %c0_39, %c0_40, %c0_41], %35 {strides = array<i32>} : memref<1x2x8x128xf32, #tpu.memory_space<vmem>>, vector<1x2x8x128xf32>,
      %cst_42 = arith.constant 0.000000e+00 : f32
      %37 = vector.broadcast %cst_42 : f32 to vector<1x2x8x128xf32>
      %c0_43 = arith.constant 0 : index
      %c0_44 = arith.constant 0 : index
      %c0_45 = arith.constant 0 : index
      %c0_46 = arith.constant 0 : index
      %38 = vector.load %arg5[%c0_43, %c0_44, %c0_45, %c0_46] : memref<1x2x8x128xf32, #tpu.memory_space<vmem>>, vector<1x2x8x128xf32>
      tpu.vector_store %arg5[%c0_43, %c0_44, %c0_45, %c0_46], %37 {strides = array<i32>} : memref<1x2x8x128xf32, #tpu.memory_space<vmem>>, vector<1x2x8x128xf32>,
      %cst_47 = arith.constant 0.000000e+00 : f32
      %39 = vector.broadcast %cst_47 : f32 to vector<1x2x8x128xf32>
      %c0_48 = arith.constant 0 : index
      %c0_49 = arith.constant 0 : index
      %c0_50 = arith.constant 0 : index
      %c0_51 = arith.constant 0 : index
      %40 = vector.load %arg6[%c0_48, %c0_49, %c0_50, %c0_51] : memref<1x2x8x128xf32, #tpu.memory_space<vmem>>, vector<1x2x8x128xf32>
      tpu.vector_store %arg6[%c0_48, %c0_49, %c0_50, %c0_51], %39 {strides = array<i32>} : memref<1x2x8x128xf32, #tpu.memory_space<vmem>>, vector<1x2x8x128xf32>,
    } else {
    }
    %cst = arith.constant 0.000000e+00 : f32
    %3 = vector.broadcast %cst : f32 to vector<2x8x128xf32>
    %c0_i32_1 = arith.constant 0 : i32
    %c4_i32 = arith.constant 4 : i32
    %4 = arith.muli %c0_i32_1, %c4_i32 : i32
    %5 = tpu.assume_multiple %4, 4 : i32
    %c0 = arith.constant 0 : index
    %6 = arith.index_cast %5 : i32 to index
    %c0_2 = arith.constant 0 : index
    %c0_3 = arith.constant 0 : index
    %7 = vector.load %arg2[%c0, %6, %c0_2, %c0_3] : memref<2x4x8x128xf32, #tpu.memory_space<vmem>>, vector<2x4x8x128xf32>
    %c0_4 = arith.constant 0 : index
    %8 = arith.index_cast %5 : i32 to index
    %c0_5 = arith.constant 0 : index
    %c0_6 = arith.constant 0 : index
    %9 = vector.load %arg3[%c0_4, %8, %c0_5, %c0_6] : memref<2x4x8x128xf32, #tpu.memory_space<vmem>>, vector<2x4x8x128xf32>
    %10 = arith.mulf %7, %9 : vector<2x4x8x128xf32>
    %cst_7 = arith.constant dense<0.000000e+00> : vector<2x8x128xf32>
    %11 = vector.multi_reduction <add>, %10, %cst_7 [1] : vector<2x4x8x128xf32> to vector<2x8x128xf32>
    %12 = arith.addf %3, %11 : vector<2x8x128xf32>
    %13 = arith.addf %7, %9 : vector<2x4x8x128xf32>
    %cst_8 = arith.constant dense<0.000000e+00> : vector<2x8x128xf32>
    %14 = vector.multi_reduction <add>, %13, %cst_8 [1] : vector<2x4x8x128xf32> to vector<2x8x128xf32>
    %15 = arith.addf %3, %14 : vector<2x8x128xf32>
    %cst_9 = arith.constant 0.000000e+00 : f32
    %16 = vector.broadcast %cst_9 : f32 to vector<2x4x8x128xf32>
    %17 = arith.cmpf ogt, %7, %16 : vector<2x4x8x128xf32>
    %cst_10 = arith.constant 1.000000e+00 : f32
    %cst_11 = arith.constant 0.000000e+00 : f32
    %18 = vector.broadcast %cst_10 : f32 to vector<2x4x8x128xf32>
    %19 = vector.broadcast %cst_11 : f32 to vector<2x4x8x128xf32>
    %20 = arith.select %17, %18, %19 : vector<2x4x8x128xi1>, vector<2x4x8x128xf32>
    %cst_12 = arith.constant dense<0.000000e+00> : vector<2x8x128xf32>
    %21 = vector.multi_reduction <add>, %20, %cst_12 [1] : vector<2x4x8x128xf32> to vector<2x8x128xf32>
    %22 = arith.addf %3, %21 : vector<2x8x128xf32>
    %c1_i32 = arith.constant 1 : i32
    %c0_13 = arith.constant 0 : index
    %c0_14 = arith.constant 0 : index
    %c0_15 = arith.constant 0 : index
    %c0_16 = arith.constant 0 : index
    %23 = vector.load %arg4[%c0_13, %c0_14, %c0_15, %c0_16] : memref<1x2x8x128xf32, #tpu.memory_space<vmem>>, vector<1x2x8x128xf32>
    %24 = vector.shape_cast %12 : vector<2x8x128xf32> to vector<1x2x8x128xf32>
    %25 = arith.addf %23, %24 : vector<1x2x8x128xf32>
    %c0_17 = arith.constant 0 : index
    %c0_18 = arith.constant 0 : index
    %c0_19 = arith.constant 0 : index
    %c0_20 = arith.constant 0 : index
    %26 = vector.load %arg4[%c0_17, %c0_18, %c0_19, %c0_20] : memref<1x2x8x128xf32, #tpu.memory_space<vmem>>, vector<1x2x8x128xf32>
    tpu.vector_store %arg4[%c0_17, %c0_18, %c0_19, %c0_20], %25 {strides = array<i32>} : memref<1x2x8x128xf32, #tpu.memory_space<vmem>>, vector<1x2x8x128xf32>,
    %c0_21 = arith.constant 0 : index
    %c0_22 = arith.constant 0 : index
    %c0_23 = arith.constant 0 : index
    %c0_24 = arith.constant 0 : index
    %27 = vector.load %arg5[%c0_21, %c0_22, %c0_23, %c0_24] : memref<1x2x8x128xf32, #tpu.memory_space<vmem>>, vector<1x2x8x128xf32>
    %28 = vector.shape_cast %15 : vector<2x8x128xf32> to vector<1x2x8x128xf32>
    %29 = arith.addf %27, %28 : vector<1x2x8x128xf32>
    %c0_25 = arith.constant 0 : index
    %c0_26 = arith.constant 0 : index
    %c0_27 = arith.constant 0 : index
    %c0_28 = arith.constant 0 : index
    %30 = vector.load %arg5[%c0_25, %c0_26, %c0_27, %c0_28] : memref<1x2x8x128xf32, #tpu.memory_space<vmem>>, vector<1x2x8x128xf32>
    tpu.vector_store %arg5[%c0_25, %c0_26, %c0_27, %c0_28], %29 {strides = array<i32>} : memref<1x2x8x128xf32, #tpu.memory_space<vmem>>, vector<1x2x8x128xf32>,
    %c0_29 = arith.constant 0 : index
    %c0_30 = arith.constant 0 : index
    %c0_31 = arith.constant 0 : index
    %c0_32 = arith.constant 0 : index
    %31 = vector.load %arg6[%c0_29, %c0_30, %c0_31, %c0_32] : memref<1x2x8x128xf32, #tpu.memory_space<vmem>>, vector<1x2x8x128xf32>
    %32 = vector.shape_cast %22 : vector<2x8x128xf32> to vector<1x2x8x128xf32>
    %33 = arith.addf %31, %32 : vector<1x2x8x128xf32>
    %c0_33 = arith.constant 0 : index
    %c0_34 = arith.constant 0 : index
    %c0_35 = arith.constant 0 : index
    %c0_36 = arith.constant 0 : index
    %34 = vector.load %arg6[%c0_33, %c0_34, %c0_35, %c0_36] : memref<1x2x8x128xf32, #tpu.memory_space<vmem>>, vector<1x2x8x128xf32>
    tpu.vector_store %arg6[%c0_33, %c0_34, %c0_35, %c0_36], %33 {strides = array<i32>} : memref<1x2x8x128xf32, #tpu.memory_space<vmem>>, vector<1x2x8x128xf32>,
    return
  }
  func.func @transform_0(%arg0: i32, %arg1: i32) -> (i32, i32, i32, i32) {
    %c1_i32 = arith.constant 1 : i32
    %0 = arith.muli %arg0, %c1_i32 : i32
    %1 = arith.addi %0, %arg1 : i32
    %c0_i32 = arith.constant 0 : i32
    %c0_i32_0 = arith.constant 0 : i32
    %c0_i32_1 = arith.constant 0 : i32
    %c0_i32_2 = arith.constant 0 : i32
    return %c0_i32, %1, %c0_i32_0, %c0_i32_1 : i32, i32, i32, i32
  }
  func.func @transform_1(%arg0: i32, %arg1: i32) -> (i32, i32, i32, i32) {
    %c1_i32 = arith.constant 1 : i32
    %0 = arith.muli %arg0, %c1_i32 : i32
    %1 = arith.addi %0, %arg1 : i32
    %c0_i32 = arith.constant 0 : i32
    %c0_i32_0 = arith.constant 0 : i32
    %c0_i32_1 = arith.constant 0 : i32
    %c0_i32_2 = arith.constant 0 : i32
    return %c0_i32, %1, %c0_i32_0, %c0_i32_1 : i32, i32, i32, i32
  }
  func.func @transform_2(%arg0: i32, %arg1: i32) -> (i32, i32, i32, i32) {
    %c0_i32 = arith.constant 0 : i32
    %c0_i32_0 = arith.constant 0 : i32
    %c0_i32_1 = arith.constant 0 : i32
    %c0_i32_2 = arith.constant 0 : i32
    return %arg0, %c0_i32, %c0_i32_0, %c0_i32_1 : i32, i32, i32, i32
  }
  func.func @transform_3(%arg0: i32, %arg1: i32) -> (i32, i32, i32, i32) {
    %c0_i32 = arith.constant 0 : i32
    %c0_i32_0 = arith.constant 0 : i32
    %c0_i32_1 = arith.constant 0 : i32
    %c0_i32_2 = arith.constant 0 : i32
    return %arg0, %c0_i32, %c0_i32_0, %c0_i32_1 : i32, i32, i32, i32
  }
  func.func @transform_4(%arg0: i32, %arg1: i32) -> (i32, i32, i32, i32) {
    %c0_i32 = arith.constant 0 : i32
    %c0_i32_0 = arith.constant 0 : i32
    %c0_i32_1 = arith.constant 0 : i32
    %c0_i32_2 = arith.constant 0 : i32
    return %arg0, %c0_i32, %c0_i32_0, %c0_i32_1 : i32, i32, i32, i32
  }
}

</mosaic_0001>

<bundles_post_ra>
// kernel: soft_iou_l1_loss.1
= control target key start
LH: loop header
LB: loop body
LE: loop exit
PB: predicated region body
PF: predicated region fallthrough
CT: control target
= control target key end

     0   :  { %v186_v25 = vmov 0.0   ;;  %s282_s0 = inlined_call_operand.vmem [shape: f32[2,4,8,128], index: 0, kind: input, shape index: {}]   ;;  %s283_s1 = inlined_call_operand.vmem [shape: f32[2,4,8,128], index: 1, kind: input, shape index: {}]   ;;  %s284_s2 = inlined_call_operand.vmem [shape: f32[1,2,8,128], index: 2, kind: output, shape index: {0}]   ;;  %s285_s3 = inlined_call_operand.vmem [shape: f32[1,2,8,128], index: 3, kind: output, shape index: {1}]   ;;  %s286_s4 = inlined_call_operand.vmem [shape: f32[1,2,8,128], index: 4, kind: output, shape index: {2}]  }
   0x1   :  { %v70_v0 = vld [vmem:[%s282_s0] sm:$0xff]  ;;  %v71_v1 = vld [vmem:[%s282_s0 + $0x8] sm:$0xff]  ;;  %v72_v2 = vld [vmem:[%s282_s0 + $0x10] sm:$0xff] }
   0x2   :  { %v73_v3 = vld [vmem:[%s282_s0 + $0x18] sm:$0xff]  ;;  %v79_v4 = vld [vmem:[%s283_s1] sm:$0xff]  ;;  %v80_v5 = vld [vmem:[%s283_s1 + $0x8] sm:$0xff]  ;;  %vm119_vm0 = vcmp.gt.f32.partialorder %v70_v0, 0.0  ;;  %vm120_vm1 = vcmp.gt.f32.partialorder %v71_v1, 0.0  ;;  %vm121_vm2 = vcmp.gt.f32.partialorder %v72_v2, 0.0 }
   0x3   :  { %v81_v6 = vld [vmem:[%s283_s1 + $0x10] sm:$0xff]  ;;  %v82_v7 = vld [vmem:[%s283_s1 + $0x18] sm:$0xff]  ;;  %v87_v8 = vmul.f32 %v79_v4, %v70_v0  ;;  %v88_v9 = vmul.f32 %v80_v5, %v71_v1  ;;  %v74_v10 = vld [vmem:[%s282_s0 + $0x20] sm:$0xff]  ;;  %v103_v11 = vadd.f32 %v79_v4, %v70_v0  ;;  %v104_v12 = vadd.f32 %v80_v5, %v71_v1 }
   0x4   :  { %v89_v13 = vmul.f32 %v81_v6, %v72_v2  ;;  %v90_v14 = vmul.f32 %v82_v7, %v73_v3  ;;  %v75_v15 = vld [vmem:[%s282_s0 + $0x28] sm:$0xff]  ;;  %v76_v16 = vld [vmem:[%s282_s0 + $0x30] sm:$0xff]  ;;  %v77_v17 = vld [vmem:[%s282_s0 + $0x38] sm:$0xff]  ;;  %v105_v18 = vadd.f32 %v81_v6, %v72_v2  ;;  %v106_v19 = vadd.f32 %v82_v7, %v73_v3 }
   0x5   :  { %v95_v20 = vadd.f32 %v88_v9, %v87_v8  ;;  %v83_v21 = vld [vmem:[%s283_s1 + $0x20] sm:$0xff]  ;;  %v84_v22 = vld [vmem:[%s283_s1 + $0x28] sm:$0xff]  ;;  %v85_v23 = vld [vmem:[%s283_s1 + $0x30] sm:$0xff]  ;;  %v111_v24 = vadd.f32 %v104_v12, %v103_v11  ;;  %vm122_vm3 = vcmp.gt.f32.partialorder %v73_v3, 0.0  ;;  %v127_v26 = vsel %vm119_vm0, 1.0, %v186_v25 }
   0x6   :  { %v86_v27 = vld [vmem:[%s283_s1 + $0x38] sm:$0xff]  ;;  %v91_v28 = vmul.f32 %v83_v21, %v74_v10  ;;  %v92_v29 = vmul.f32 %v84_v22, %v75_v15  ;;  %v93_v30 = vmul.f32 %v85_v23, %v76_v16  ;;  %v107_v31 = vadd.f32 %v83_v21, %v74_v10 }
   0x7   :  { %v96_v32 = vadd.f32 %v95_v20, %v89_v13  ;;  %v94_v33 = vmul.f32 %v86_v27, %v77_v17  ;;  %v112_v34 = vadd.f32 %v111_v24, %v105_v18  ;;  %v108_v35 = vadd.f32 %v84_v22, %v75_v15 }
   0x8   :  { %v98_v36 = vadd.f32 %v92_v29, %v91_v28  ;;  %v109_v37 = vadd.f32 %v85_v23, %v76_v16  ;;  %v110_v38 = vadd.f32 %v86_v27, %v77_v17  ;;  %v128_v39 = vsel %vm120_vm1, 1.0, %v186_v25 }
   0x9   :  { %v97_v40 = vadd.f32 %v96_v32, %v90_v14  ;;  %v113_v41 = vadd.f32 %v112_v34, %v106_v19  ;;  %v114_v42 = vadd.f32 %v108_v35, %v107_v31  ;;  %v129_v43 = vsel %vm121_vm2, 1.0, %v186_v25 }
   0xa   :  { %v99_v44 = vadd.f32 %v98_v36, %v93_v30  ;;  %v130_v45 = vsel %vm122_vm3, 1.0, %v186_v25  ;;  %v135_v46 = vadd.f32 %v128_v39, %v127_v26  ;;  %vm123_vm4 = vcmp.gt.f32.partialorder %v74_v10, 0.0 }
   0xb   :  { %v115_v47 = vadd.f32 %v114_v42, %v109_v37  ;;  %vm124_vm5 = vcmp.gt.f32.partialorder %v75_v15, 0.0  ;;  %vm125_vm6 = vcmp.gt.f32.partialorder %v76_v16, 0.0  ;;  %vm126_vm7 = vcmp.gt.f32.partialorder %v77_v17, 0.0  ;;  %147 = vst [vmem:[%s284_s2] sm:$0xff] %v97_v40  ;;  %153 = vst [vmem:[%s285_s3] sm:$0xff] %v113_v41 }
   0xc   :  { %v100_v48 = vadd.f32 %v99_v44, %v94_v33  ;;  %v136_v49 = vadd.f32 %v135_v46, %v129_v43  ;;  %v131_v51 = vsel %vm123_vm4, 1.0, %v186_v25  ;;  %v132_v52 = vsel %vm124_vm5, 1.0, %v186_v25 }
   0xd   :  { %v116_v50 = vadd.f32 %v115_v47, %v110_v38  ;;  %v133_v53 = vsel %vm125_vm6, 1.0, %v186_v25  ;;  %v138_v55 = vadd.f32 %v132_v52, %v131_v51  ;;  %v134_v56 = vsel %vm126_vm7, 1.0, %v186_v25 }
   0xe   :  { %v137_v54 = vadd.f32 %v136_v49, %v130_v45  ;;  %148 = vst [vmem:[%s284_s2 + $0x8] sm:$0xff] %v100_v48 }
   0xf   :  { %v139_v57 = vadd.f32 %v138_v55, %v133_v53  ;;  %154 = vst [vmem:[%s285_s3 + $0x8] sm:$0xff] %v116_v50 }
  0x10   :  { %159 = vst [vmem:[%s286_s4] sm:$0xff] %v137_v54 }
  0x11   :  { %v140_v58 = vadd.f32 %v139_v57, %v134_v56 }
  0x13   :  { %160 = vst [vmem:[%s286_s4 + $0x8] sm:$0xff] %v140_v58 }

</bundles_post_ra>
